<compile_context>
chip_gen: v5e
topology: v5e:2x2
jax: 0.10.0
libtpu: 0.0.40
codegen_flags: <defaults>
</compile_context>

<pallas_src>
import jax
import jax.numpy as jnp
from jax.experimental import pallas as pl
from jax.experimental.pallas import tpu as pltpu


def attention_kernel(text_ref, aspect_ref, wt_ref, wc_ref, weight_ref, out_ref):
    Bb, S, H = text_ref.shape
    mm_dtype = wt_ref.dtype                      # MXU operand dtype (bf16 or f32)

    text_f32 = text_ref[...]                     # [Bb, S, H] f32 (kept exact for bmm)
    aspect = aspect_ref[...]                     # [Bb, S, H] f32
    wt = wt_ref[...]                             # [H, H]   pre-transposed W_text
    wc = wc_ref[...]                             # [2, H]   f32 (row0=wc_text, row1=wc_aspect)

    # ---- shared-RHS MXU projections over all batches in the block ----
    t2d = text_f32.reshape(Bb * S, H).astype(mm_dtype)
    a2d = aspect.reshape(Bb * S, H).astype(mm_dtype)
    mt = jnp.tanh(jnp.dot(t2d, wt, preferred_element_type=jnp.float32)).reshape(Bb, S, H)
    ma = jnp.tanh(jnp.dot(a2d, wt, preferred_element_type=jnp.float32)).reshape(Bb, S, H)

    # ---- score: VPU multiply + lane reduce (no N=1 matmul on the MXU) ----
    wc_t = wc[0:1, :].reshape(1, 1, H)           # broadcasts hoisted once per grid step
    wc_a = wc[1:2, :].reshape(1, 1, H)
    score = jnp.sum(mt * wc_t + ma * wc_a, axis=-1)          # [Bb, S] f32
    # TODO(synk): nn.Dropout on the score is identity at inference; training-mode
    # stochastic dropout (pltpu.prng_*) is not implemented.

    # ---- softmax over the sequence axis (torch dim=1), in f32 ----
    mx = jnp.max(score, axis=-1, keepdims=True)
    e = jnp.exp(score - mx)
    denom = jnp.sum(e, axis=-1, keepdims=True)
    w = e * pl.reciprocal(denom, approx=True)                # [Bb, S]

    # ---- context vector: broadcast-multiply + sublane reduce on exact f32 text ----
    ctx = jnp.sum(w[:, :, None] * text_f32, axis=1)          # [Bb, H] f32

    weight_ref[...] = w.astype(weight_ref.dtype)
    out_ref[...] = ctx.astype(out_ref.dtype)


def _choose_block_batches(B, S, H, vmem_budget_bytes=12 * 1024 * 1024):
    """Largest batch-block Bb (divisor of B) whose double-buffered f32 input blocks
    plus in-kernel intermediates fit a conservative VMEM budget (safe for v7x's
    64 MiB VMEM).  Prefers Bb == B (single grid step) or an 8-aligned Bb so the
    blocked output sublane dims stay (8, 128)-tileable."""
    per_batch = (2 * (2 * S * H * 4)        # double-buffered f32 text+aspect blocks
                 + 14 * S * H               # bf16 copies + f32 mt/ma intermediates
                 + 8 * (S + H))             # double-buffered output slabs
    divisors = [d for d in range(1, B + 1) if B % d == 0]
    candidates = [d for d in divisors if d == B or d % 8 == 0] or divisors
    best = candidates[0]
    for d in sorted(candidates):
        if d * per_batch <= vmem_budget_bytes:
            best = d
    return best


def attention_forward(text, aspect, w_text, w_combine, matmul_dtype=jnp.bfloat16):
    """
    text, aspect : [B, S, H] float32
    w_text       : [H, H]   (PyTorch Linear weight, y = x @ w_text^T)
    w_combine    : [1, 2H]  (PyTorch Linear weight)
    returns (weight [B, 1, S], out [B, 1, H]) in float32
    """
    B, S, H = text.shape
    out_dtype = jnp.float32

    text = text.astype(jnp.float32)
    aspect = aspect.astype(jnp.float32)
    # Tiny weight-side glue only (no activation-sized HBM round trips).
    wt_T = w_text.T.astype(matmul_dtype)                                    # [H, H]
    wc2 = jnp.stack([w_combine[0, :H], w_combine[0, H:]], axis=0).astype(jnp.float32)  # [2, H]

    Bb = _choose_block_batches(B, S, H)
    grid = (B // Bb,)

    weight2d, out2d = pl.pallas_call(
        attention_kernel,
        out_shape=(
            jax.ShapeDtypeStruct((B, S), out_dtype),
            jax.ShapeDtypeStruct((B, H), out_dtype),
        ),
        grid_spec=pltpu.PrefetchScalarGridSpec(
            num_scalar_prefetch=0,
            grid=grid,
            in_specs=[
                pl.BlockSpec((Bb, S, H), lambda i: (i, 0, 0)),   # text  (f32)
                pl.BlockSpec((Bb, S, H), lambda i: (i, 0, 0)),   # aspect (f32)
                pl.BlockSpec((H, H), lambda i: (0, 0)),          # w_text^T (shared)
                pl.BlockSpec((2, H), lambda i: (0, 0)),          # w_combine halves, lane-dense
            ],
            out_specs=[
                pl.BlockSpec((Bb, S), lambda i: (i, 0)),         # weight slab
                pl.BlockSpec((Bb, H), lambda i: (i, 0)),         # out slab
            ],
        ),
        compiler_params=pltpu.CompilerParams(
            dimension_semantics=("parallel",),       # megacore split on v7x
            vmem_limit_bytes=32 * 1024 * 1024,
        ),
    )(text, aspect, wt_T, wc2)

    return weight2d.reshape(B, 1, S), out2d.reshape(B, 1, H)


def reference_forward(text, aspect, w_text, w_combine):
    m_text = jnp.einsum("bsh,oh->bso", text, w_text)
    m_aspect = jnp.einsum("bsh,oh->bso", aspect, w_text)
    combine = jnp.tanh(jnp.concatenate([m_text, m_aspect], axis=2))
    score = jnp.einsum("bsc,oc->bso", combine, w_combine)      # [B, S, 1]
    weight = jax.nn.softmax(score, axis=1).transpose(0, 2, 1)  # [B, 1, S]
    out = jnp.einsum("bos,bsh->boh", weight, text)             # [B, 1, H]
    return weight, out


if __name__ == "__main__":
    B, S, H = 2, 8, 32
    uniform_rate = 0.1

    key = jax.random.PRNGKey(0)
    k_text, k_aspect, k_wt, k_wa, k_wc = jax.random.split(key, 5)

    text = jax.random.normal(k_text, (B, S, H), dtype=jnp.float32)
    aspect = jax.random.normal(k_aspect, (B, S, H), dtype=jnp.float32)

    # Deterministic parameter init mirroring reset_parameters(): uniform(-r, r)
    w_text = jax.random.uniform(k_wt, (H, H), minval=-uniform_rate,
                                maxval=uniform_rate, dtype=jnp.float32)
    w_aspect = jax.random.uniform(k_wa, (H, H), minval=-uniform_rate,
                                  maxval=uniform_rate, dtype=jnp.float32)  # unused in forward
    w_combine = jax.random.uniform(k_wc, (1, 2 * H), minval=-uniform_rate,
                                   maxval=uniform_rate, dtype=jnp.float32)

    ref_w, ref_o = reference_forward(text, aspect, w_text, w_combine)

    # Exact-dtype path (f32 MXU operands): matches the f32 reference up to the
    # approximate-reciprocal softmax normalization.
    w32, o32 = attention_forward(text, aspect, w_text, w_combine,
                                 matmul_dtype=jnp.float32)
    jax.block_until_ready((w32, o32))
    assert w32.shape == (B, 1, S) and o32.shape == (B, 1, H)
    assert jnp.allclose(w32, ref_w, atol=2e-3, rtol=2e-3)
    assert jnp.allclose(o32, ref_o, atol=2e-3, rtol=2e-3)

    # Default performance path (bf16 MXU operands; softmax and the weighted sum
    # over the exact f32 text stay in f32).
    wbf, obf = attention_forward(text, aspect, w_text, w_combine)
    jax.block_until_ready((wbf, obf))
    assert wbf.shape == (B, 1, S) and obf.shape == (B, 1, H)
    assert jnp.allclose(wbf, ref_w, atol=1e-2, rtol=1e-2)
    assert jnp.allclose(obf, ref_o, atol=1e-2, rtol=1e-2)

    print("KERNEL_OK")
</pallas_src>

<mosaic_0001>
module attributes {stable_mosaic.version = 11 : i64} {
  func.func @attention_kernel(%arg0: i32, %arg1: memref<2x8x32xf32, #tpu.memory_space<vmem>>, %arg2: memref<2x8x32xf32, #tpu.memory_space<vmem>>, %arg3: memref<32x32xf32, #tpu.memory_space<vmem>>, %arg4: memref<2x32xf32, #tpu.memory_space<vmem>>, %arg5: memref<2x8xf32, #tpu.memory_space<vmem>>, %arg6: memref<2x32xf32, #tpu.memory_space<vmem>>) attributes {dimension_semantics = [#tpu.dimension_semantics<parallel>], iteration_bounds = array<i64: 1>, scalar_prefetch = 0 : i64, scratch_operands = 0 : i64, tpu.core_type = #tpu.core_type<tc>, window_params = [{transform_indices = @transform_0, window_bounds = array<i64: 2, 8, 32>}, {transform_indices = @transform_1, window_bounds = array<i64: 2, 8, 32>}, {pipeline_mode = #tpu.pipeline_mode<synchronous>, transform_indices = @transform_2, window_bounds = array<i64: 32, 32>}, {pipeline_mode = #tpu.pipeline_mode<synchronous>, transform_indices = @transform_3, window_bounds = array<i64: 2, 32>}, {transform_indices = @transform_4, window_bounds = array<i64: 2, 8>}, {transform_indices = @transform_5, window_bounds = array<i64: 2, 32>}]} {
    %c0 = arith.constant 0 : index
    %c0_0 = arith.constant 0 : index
    %c0_1 = arith.constant 0 : index
    %0 = vector.load %arg1[%c0, %c0_0, %c0_1] : memref<2x8x32xf32, #tpu.memory_space<vmem>>, vector<2x8x32xf32>
    %c0_2 = arith.constant 0 : index
    %c0_3 = arith.constant 0 : index
    %c0_4 = arith.constant 0 : index
    %1 = vector.load %arg2[%c0_2, %c0_3, %c0_4] : memref<2x8x32xf32, #tpu.memory_space<vmem>>, vector<2x8x32xf32>
    %c0_5 = arith.constant 0 : index
    %c0_6 = arith.constant 0 : index
    %2 = vector.load %arg3[%c0_5, %c0_6] : memref<32x32xf32, #tpu.memory_space<vmem>>, vector<32x32xf32>
    %c0_7 = arith.constant 0 : index
    %c0_8 = arith.constant 0 : index
    %3 = vector.load %arg4[%c0_7, %c0_8] : memref<2x32xf32, #tpu.memory_space<vmem>>, vector<2x32xf32>
    %4 = vector.shape_cast %0 : vector<2x8x32xf32> to vector<16x32xf32>
    %5 = vector.shape_cast %1 : vector<2x8x32xf32> to vector<16x32xf32>
    %cst = arith.constant dense<0.000000e+00> : vector<16x32xf32>
    %6 = tpu.matmul %4, %2, %cst {dimension_numbers = #tpu.dot_dimension_numbers<[1], [0], [0], [1], [0, 0, 1, 1], [], []>} : vector<16x32xf32>, vector<32x32xf32>, vector<16x32xf32> -> vector<16x32xf32>
    %7 = math.tanh %6 : vector<16x32xf32>
    %8 = vector.shape_cast %7 : vector<16x32xf32> to vector<2x8x32xf32>
    %cst_9 = arith.constant dense<0.000000e+00> : vector<16x32xf32>
    %9 = tpu.matmul %5, %2, %cst_9 {dimension_numbers = #tpu.dot_dimension_numbers<[1], [0], [0], [1], [0, 0, 1, 1], [], []>} : vector<16x32xf32>, vector<32x32xf32>, vector<16x32xf32> -> vector<16x32xf32>
    %10 = math.tanh %9 : vector<16x32xf32>
    %11 = vector.shape_cast %10 : vector<16x32xf32> to vector<2x8x32xf32>
    %12 = vector.extract_strided_slice %3 {offsets = [0, 0], sizes = [1, 32], strides = [1, 1]} : vector<2x32xf32> to vector<1x32xf32>
    %13 = vector.shape_cast %12 : vector<1x32xf32> to vector<1x1x32xf32>
    %14 = vector.extract_strided_slice %3 {offsets = [1, 0], sizes = [1, 32], strides = [1, 1]} : vector<2x32xf32> to vector<1x32xf32>
    %15 = vector.shape_cast %14 : vector<1x32xf32> to vector<1x1x32xf32>
    %16 = vector.broadcast %13 : vector<1x1x32xf32> to vector<2x8x32xf32>
    %17 = arith.mulf %8, %16 : vector<2x8x32xf32>
    %18 = vector.broadcast %15 : vector<1x1x32xf32> to vector<2x8x32xf32>
    %19 = arith.mulf %11, %18 : vector<2x8x32xf32>
    %20 = arith.addf %17, %19 : vector<2x8x32xf32>
    %cst_10 = arith.constant dense<0.000000e+00> : vector<2x8xf32>
    %21 = vector.multi_reduction <add>, %20, %cst_10 [2] : vector<2x8x32xf32> to vector<2x8xf32>
    %cst_11 = arith.constant dense<0xFF800000> : vector<2xf32>
    %22 = vector.multi_reduction <maximumf>, %21, %cst_11 [1] : vector<2x8xf32> to vector<2xf32>
    %23 = vector.shape_cast %22 : vector<2xf32> to vector<2x1xf32>
    %24 = vector.broadcast %23 : vector<2x1xf32> to vector<2x8xf32>
    %25 = arith.subf %21, %24 : vector<2x8xf32>
    %26 = math.exp %25 : vector<2x8xf32>
    %cst_12 = arith.constant dense<0.000000e+00> : vector<2xf32>
    %27 = vector.multi_reduction <add>, %26, %cst_12 [1] : vector<2x8xf32> to vector<2xf32>
    %28 = vector.shape_cast %27 : vector<2xf32> to vector<2x1xf32>
    %29 = tpu.reciprocal %28 {approx = true} : vector<2x1xf32> -> vector<2x1xf32>
    %30 = vector.broadcast %29 : vector<2x1xf32> to vector<2x8xf32>
    %31 = arith.mulf %26, %30 : vector<2x8xf32>
    %32 = vector.shape_cast %31 : vector<2x8xf32> to vector<2x8x1xf32>
    %33 = vector.broadcast %32 : vector<2x8x1xf32> to vector<2x8x32xf32>
    %34 = arith.mulf %33, %0 : vector<2x8x32xf32>
    %cst_13 = arith.constant dense<0.000000e+00> : vector<2x32xf32>
    %35 = vector.multi_reduction <add>, %34, %cst_13 [1] : vector<2x8x32xf32> to vector<2x32xf32>
    %c0_14 = arith.constant 0 : index
    %c0_15 = arith.constant 0 : index
    %36 = vector.load %arg5[%c0_14, %c0_15] : memref<2x8xf32, #tpu.memory_space<vmem>>, vector<2x8xf32>
    tpu.vector_store %arg5[%c0_14, %c0_15], %31 {strides = array<i32>} : memref<2x8xf32, #tpu.memory_space<vmem>>, vector<2x8xf32>,
    %c0_16 = arith.constant 0 : index
    %c0_17 = arith.constant 0 : index
    %37 = vector.load %arg6[%c0_16, %c0_17] : memref<2x32xf32, #tpu.memory_space<vmem>>, vector<2x32xf32>
    tpu.vector_store %arg6[%c0_16, %c0_17], %35 {strides = array<i32>} : memref<2x32xf32, #tpu.memory_space<vmem>>, vector<2x32xf32>,
    return
  }
  func.func @transform_0(%arg0: i32) -> (i32, i32, i32) {
    %c0_i32 = arith.constant 0 : i32
    %c0_i32_0 = arith.constant 0 : i32
    %c0_i32_1 = arith.constant 0 : i32
    return %arg0, %c0_i32, %c0_i32_0 : i32, i32, i32
  }
  func.func @transform_1(%arg0: i32) -> (i32, i32, i32) {
    %c0_i32 = arith.constant 0 : i32
    %c0_i32_0 = arith.constant 0 : i32
    %c0_i32_1 = arith.constant 0 : i32
    return %arg0, %c0_i32, %c0_i32_0 : i32, i32, i32
  }
  func.func @transform_2(%arg0: i32) -> (i32, i32) {
    %c0_i32 = arith.constant 0 : i32
    %c0_i32_0 = arith.constant 0 : i32
    %c0_i32_1 = arith.constant 0 : i32
    return %c0_i32, %c0_i32_0 : i32, i32
  }
  func.func @transform_3(%arg0: i32) -> (i32, i32) {
    %c0_i32 = arith.constant 0 : i32
    %c0_i32_0 = arith.constant 0 : i32
    %c0_i32_1 = arith.constant 0 : i32
    return %c0_i32, %c0_i32_0 : i32, i32
  }
  func.func @transform_4(%arg0: i32) -> (i32, i32) {
    %c0_i32 = arith.constant 0 : i32
    %c0_i32_0 = arith.constant 0 : i32
    return %arg0, %c0_i32 : i32, i32
  }
  func.func @transform_5(%arg0: i32) -> (i32, i32) {
    %c0_i32 = arith.constant 0 : i32
    %c0_i32_0 = arith.constant 0 : i32
    return %arg0, %c0_i32 : i32, i32
  }
}

</mosaic_0001>

<bundles_post_ra>
// kernel: tpu_custom_call.1
= control target key start
LH: loop header
LB: loop body
LE: loop exit
PB: predicated region body
PF: predicated region fallthrough
CT: control target
= control target key end

     0   :  { %11 = vsyncpa [#allocation3], 0  ;;  %s516_s0 = inlined_call_operand.hbm [shape: f32[2,8,32], index: 0, kind: input, shape index: {}]   ;;  %s517_s1 = inlined_call_operand.hbm [shape: f32[2,8,32], index: 1, kind: input, shape index: {}]   ;;  %s518_s2 = inlined_call_operand.hbm [shape: f32[32,32], index: 2, kind: input, shape index: {}]   ;;  %s519_s3 = inlined_call_operand.vmem [shape: f32[2,32], index: 3, kind: input, shape index: {}]   ;;  %s520_s4 = inlined_call_operand.hbm [shape: f32[2,8], index: 4, kind: output, shape index: {0}]   ;;  %s521_s5 = inlined_call_operand.hbm [shape: f32[2,32], index: 5, kind: output, shape index: {1}]  }
   0x1   :  { %12 = vsyncpa [#allocation6], 0 }
   0x2   :  { %13 = vsyncpa [#allocation4], 0 }
   0x3   :  { %14 = vsyncpa [#allocation10], 0  ;;  %s32_s20 = sshll.u32 %s517_s1, 4  ;;  %s437_s21 = smov [#allocation5]   ;;  %s33_s20 = int_to_ptr.hbm [resolvable:$true] %s32_s20 }
   0x4   :  { %s34_s22 = sshll.u32 %s437_s21, 4  ;;  %s19_s25 = sshll.u32 %s516_s0, 4  ;;  %s35_s22 = int_to_ptr.vmem [resolvable:$true] %s34_s22  ;;  %s20_s25 = int_to_ptr.hbm [resolvable:$true] %s19_s25 }
   0x5   :  { %s438_s26 = smov 128   ;;  %s439_s27 = smov 8  }
   0x6   :  { %40 = dma.hbm_to_vmem [thread:$0]  %s33_s20, 256, %s35_s22, [#allocation6], %s438_s26, %s438_s26, %s439_s27  }
   0x7   :  { %s440_s28 = smov [#allocation2]   ;;  %s45_s7 = sshll.u32 %s518_s2, 4  ;;  %s46_s7 = int_to_ptr.hbm [resolvable:$true] %s45_s7 }
   0x8   :  { %s21_s29 = sshll.u32 %s440_s28, 4  ;;  %s441_s1 = smov [#allocation7]   ;;  %s22_s29 = int_to_ptr.vmem [resolvable:$true] %s21_s29 }
   0x9   :  { %27 = dma.hbm_to_vmem [thread:$0]  %s20_s25, 256, %s22_s29, [#allocation3], %s438_s26, %s438_s26, %s439_s27  }
   0xa   :  { %s47_s8 = sshll.u32 %s441_s1, 4  ;;  %s48_s8 = int_to_ptr.vmem [resolvable:$true] %s47_s8 }
   0xb   :  { %53 = dma.hbm_to_vmem [thread:$0]  %s46_s7, 512, %s48_s8, [#allocation6], %s438_s26, %s438_s26, %s439_s27  }
   0xc   :  { %429 = dma.done.wait [#allocation3], 256  }
   0xd   :  { %430 = vsyncadd [#allocation3], 4294967040 }
   0xe   :  { %431 = dma.done.wait [#allocation6], 768  }
   0xf   :  { %432 = vsyncadd [#allocation6], 4294966528  ;;  %v75_v0 = vld [vmem:[#allocation7 + $0x18] sm:$0xff]  ;;  %v74_v1 = vld [vmem:[#allocation7 + $0x10] sm:$0xff]  ;;  %vm77_vm0 = vcmask 261120   ;;  %v156_v28 = vlaneseq  ;;  %vm160_vm1 = vcmask 1041409  }
  0x10   :  { %96 = vmatpush.msra.mxu0 %v75_v0  ;;  %127 = vmatpush.msra.mxu1 %v75_v0  ;;  %v73_v2 = vld [vmem:[#allocation7 + $0x8] sm:$0xff]  ;;  %v72_v3 = vld [vmem:[#allocation7] sm:$0xff]  ;;  %v70_v5 = vld [vmem:[#allocation5] sm:$0xff]  ;;  %vm163_vm2 = vcmask 58368   ;;  %v442_v35 = vmov 0   ;;  %s245_s12 = sshll.u32 %s520_s4, 4  ;;  %s246_s12 = int_to_ptr.hbm [resolvable:$true] %s245_s12 }
  0x11   :  { %276 = vmatpush.msra.mxu2 %v75_v0  ;;  %280 = vmatpush.msra.mxu3 %v75_v0  ;;  %v484_v4 = vld [vmem:[#allocation2] sm:$0xff]  ;;  %v486_v6 = vld [vmem:[#allocation2 + $0x8] sm:$0xff]  ;;  %v71_v7 = vld [vmem:[#allocation5 + $0x8] sm:$0xff]  ;;  %v157_v29 = vand.u32 127, %v156_v28  ;;  %s444_s4 = smov [#allocation9]   ;;  %s256_s16 = sshll.u32 %s521_s5, 4  ;;  %s257_s16 = int_to_ptr.hbm [resolvable:$true] %s256_s16 }
  0x12   :  { %97 = vmatpush.msra.mxu0 %v74_v1  ;;  %128 = vmatpush.msra.mxu1 %v74_v1  ;;  %v76_v10 = vld [vmem:[%s519_s3] sm:$0x3]  ;;  %s443_s3 = smov [#allocation8]   ;;  %s254_s13 = sshll.u32 %s444_s4, 4  ;;  %vm236_vm3 = vcmask 254976   ;;  %s255_s13 = int_to_ptr.vmem [resolvable:$true] %s254_s13 }
  0x13   :  { %277 = vmatpush.msra.mxu2 %v74_v1  ;;  %281 = vmatpush.msra.mxu3 %v74_v1  ;;  %v140_v11 = vperm.slane %v76_v10, 0  ;;  %v143_v12 = vperm.slane %v76_v10, 1  ;;  %s243_s9 = sshll.u32 %s443_s3, 4  ;;  %s244_s9 = int_to_ptr.vmem [resolvable:$true] %s243_s9 }
  0x14   :  { %98 = vmatpush.msra.mxu0 %v73_v2  ;;  %129 = vmatpush.msra.mxu1 %v73_v2 }
  0x15   :  { %278 = vmatpush.msra.mxu2 %v73_v2  ;;  %282 = vmatpush.msra.mxu3 %v73_v2 }
  0x16   :  { %99 = vmatpush.msra.mxu0 %v72_v3  ;;  %130 = vmatpush.msra.mxu1 %v72_v3 }
  0x17   :  { %272 = vmatmul.msk.f32.vlgmr.msra.gmra.mxu0 %vm77_vm0, %v484_v4  ;;  %274 = vmatmul.msk.f32.vlgmr.msra.gmra.mxu1 %vm77_vm0, %v70_v5 }
  0x18   :  { %279 = vmatpush.msra.mxu2 %v72_v3  ;;  %283 = vmatpush.msra.mxu3 %v72_v3 }
  0x19   :  { %273 = vmatmul.msk.f32.vlgmr.msra.gmra.mxu2 %vm77_vm0, %v486_v6  ;;  %275 = vmatmul.msk.f32.vlgmr.msra.gmra.mxu3 %vm77_vm0, %v71_v7 }
  0x1a   :  { %293 = vset.pattern.permute.xlu2 %v442_v35  ;;  %292 = vset.pattern.permute.xlu1 %v442_v35 }
  0x1b   :  { %294 = vset.pattern.permute.xlu0 %v442_v35 }
  0x94   :  { %v101_v8 = vpop.f32.mrf.mxu0  ;;  %v132_v9 = vpop.f32.mrf.mxu1 }
  0x95   :  { %295 = vtanh.f32 %v101_v8 }
  0x96   :  { %297 = vtanh.f32 %v132_v9 }
  0x9b   :  { %v296_v13 = vpop.eup %295 }
  0x9c   :  { %v298_v14 = vpop.eup %297  ;;  %v104_v15 = vpop.f32.mrf.mxu2  ;;  %v141_v17 = vmul.f32 %v296_v13, %v140_v11 }
  0x9d   :  { %v135_v16 = vpop.f32.mrf.mxu3  ;;  %299 = vtanh.f32 %v104_v15  ;;  %v144_v18 = vmul.f32 %v298_v14, %v143_v12 }
  0x9e   :  { %301 = vtanh.f32 %v135_v16 }
  0x9f   :  { %v146_v19 = vadd.f32 %v144_v18, %v141_v17 }
  0xa1   :  { %v148_v20 = vsel %vm77_vm0, %v146_v19, 0.0 }
  0xa2   :  { %149 = vadd.xlane.f32.xlu0 %v148_v20 }
  0xa3   :  { %v300_v21 = vpop.eup %299 }
  0xa4   :  { %v302_v22 = vpop.eup %301  ;;  %v142_v23 = vmul.f32 %v300_v21, %v140_v11 }
  0xa5   :  { %v145_v24 = vmul.f32 %v302_v22, %v143_v12 }
  0xa7   :  { %v147_v25 = vadd.f32 %v145_v24, %v142_v23 }
  0xa9   :  { %v151_v26 = vsel %vm77_vm0, %v147_v25, 0.0 }
  0xaa   :  { %152 = vadd.xlane.f32.xlu0 %v151_v26 }
 0x115   :  { %v150_v27 = vpop.xlane.xlu0 %149 }
 0x116   :  { %v158_v31 = vperm.slane %v150_v27, %v157_v29 }
 0x11d   :  { %v153_v30 = vpop.xlane.xlu0 %152 }
 0x11e   :  { %v159_v32 = vperm.slane %v153_v30, %v157_v29 }
 0x120   :  { %v161_v33 = vsel %vm160_vm1, %v159_v32, %v158_v31 }
 0x121   :  { %v164_v34 = vsel %vm163_vm2, %v161_v33, -inf }
 0x122   :  { %165 = vmax.xlane.f32.xlu1 %v164_v34 }
 0x195   :  { %v166_v36 = vpop.xlane.xlu1 %165 }
 0x196   :  { %v168_v37 = vperm.slane %v166_v36, 0  ;;  %v169_v38 = vperm.slane %v166_v36, 1 }
 0x198   :  { %v172_v39 = vsub.f32 %v150_v27, %v168_v37  ;;  %v173_v40 = vsub.f32 %v153_v30, %v169_v38 }
 0x19a   :  { %v174_v41 = vmul.f32 1.442695, %v172_v39  ;;  %v176_v42 = vmul.f32 1.442695, %v173_v40 }
 0x19c   :  { %303 = vpow2.f32 %v174_v41 }
 0x19d   :  { %305 = vpow2.f32 %v176_v42 }
 0x1a2   :  { %v304_v43 = vpop.eup %303 }
 0x1a3   :  { %v306_v44 = vpop.eup %305  ;;  %181 = vperm.xlu1 %292, %v304_v43  }
 0x1a4   :  { %184 = vperm.xlu2 %293, %v306_v44  }
 0x1fe   :  { %v185_v45 = vpop.permute.xlu2 %184 }
 0x1ff   :  { %v187_v47 = vperm.slane %v185_v45, %v157_v29 }
 0x215   :  { %v182_v46 = vpop.permute.xlu1 %181 }
 0x216   :  { %v186_v48 = vperm.slane %v182_v46, %v157_v29 }
 0x218   :  { %v188_v49 = vsel %vm160_vm1, %v187_v47, %v186_v48 }
 0x219   :  { %v190_v50 = vsel %vm163_vm2, %v188_v49, 0.0 }
 0x21a   :  { %191 = vadd.xlane.f32.xlu2 %v190_v50 }
 0x28d   :  { %v192_v51 = vpop.xlane.xlu2 %191 }
 0x28e   :  { %307 = vrcp.f32 %v192_v51 }
 0x294   :  { %v308_v52 = vpop.eup %307 }
 0x295   :  { %v196_v53 = vperm.slane %v308_v52, 1  ;;  %v195_v54 = vperm.slane %v308_v52, 0 }
 0x297   :  { %v200_v55 = vmul.f32 %v306_v44, %v196_v53  ;;  %v199_v56 = vmul.f32 %v304_v43, %v195_v54 }
 0x299   :  { %208 = vperm.xlu1 %292, %v200_v55   ;;  %203 = vperm.xlu0 %294, %v199_v56  }
 0x30b   :  { %v209_v57 = vpop.permute.xlu1 %208  ;;  %v204_v58 = vpop.permute.xlu0 %203 }
 0x30c   :  { %v212_v59 = vmul.f32 %v209_v57, %v486_v6  ;;  %v228_v60 = vperm.slane %v209_v57, %v157_v29  ;;  %v211_v61 = vmul.f32 %v204_v58, %v484_v4  ;;  %v227_v62 = vperm.slane %v204_v58, %v157_v29 }
 0x30e   :  { %v220_v63 = vsel %vm77_vm0, %v212_v59, 0.0  ;;  %v213_v0 = vsel %vm77_vm0, %v211_v61, 0.0  ;;  %v229_v1 = vsel %vm160_vm1, %v228_v60, %v227_v62 }
 0x30f   :  { %v221_v2 = vrot.slane %v220_v63, 4  ;;  %v214_v3 = vrot.slane %v213_v0, 4  ;;  %231 = vst.msk [vmem:[#allocation8] sm:$0x3] %vm163_vm2, %v229_v1 }
 0x310   :  { %248 = dma.vmem_to_hbm [thread:$0]  %s244_s9, 32, %s246_s12, [#allocation4]  }
 0x311   :  { %v222_v5 = vadd.f32 %v221_v2, %v220_v63  ;;  %v215_v7 = vadd.f32 %v214_v3, %v213_v0 }
 0x313   :  { %v223_v6 = vrot.slane %v222_v5, 2  ;;  %v216_v8 = vrot.slane %v215_v7, 2 }
 0x315   :  { %v224_v9 = vadd.f32 %v223_v6, %v222_v5  ;;  %v217_v4 = vadd.f32 %v216_v8, %v215_v7 }
 0x317   :  { %v225_v10 = vrot.slane %v224_v9, 1  ;;  %v218_v11 = vrot.slane %v217_v4, 1 }
 0x319   :  { %v226_v12 = vadd.f32 %v225_v10, %v224_v9  ;;  %v219_v13 = vadd.f32 %v218_v11, %v217_v4 }
 0x31b   :  { %v234_v14 = vsel %vm160_vm1, %v226_v12, %v219_v13 }
 0x31c   :  { %237 = vst.msk [vmem:[#allocation9] sm:$0x3] %vm236_vm3, %v234_v14 }
 0x31d   :  { %259 = dma.vmem_to_hbm [thread:$0]  %s255_s13, 32, %s257_s16, [#allocation10]  }
 0x31e   :  { %433 = dma.done.wait [#allocation4], 32  }
 0x31f   :  { %434 = vsyncadd [#allocation4], 4294967264 }
 0x320   :  { %435 = dma.done.wait [#allocation10], 32  }
 0x321   :  { %436 = vsyncadd [#allocation10], 4294967264 }
 0x322   :  { %268 = vsyncpa [#allocation3], 1 }
 0x323   :  { %269 = vsyncpa [#allocation6], 1 }
 0x324   :  { %270 = vsyncpa [#allocation4], 1 }
 0x325   :  { %271 = vsyncpa [#allocation10], 1 }

</bundles_post_ra>
